<compile_context>
chip_gen: v7x
topology: tpu7x:2x2x1
jax: 0.10.0
libtpu: 0.0.40
codegen_flags: <defaults>
</compile_context>

<pallas_src>
import jax
import jax.numpy as jnp
from jax.experimental import pallas as pl
from jax.experimental.pallas import tpu as pltpu

_EPS = 1e-5
_VMEM_LIMIT = 48 * 1024 * 1024      # < v7x's 64 MiB physical; plenty on v5e/v6e
_MAX_TILE_COLS = 32768              # ~6 MiB/step of VMEM incl. double buffering


# --------------------------------------------------------------------------- #
# Kernels
# --------------------------------------------------------------------------- #
def _stats_kernel(g_ref, x_ref, rs_ref, gram_ref):
    """Pass 1: row sums + Gram matrix of the concatenated inputs a = [g; x].

    The per-channel sums / sums-of-squares of the raw (bias-free) 1x1-conv
    outputs needed for training-mode BN are derived in the wrapper:
        sum(W a)     = W @ rowsum(a)
        sumsq(W a)_c = w_c^T Gram(a) w_c
    so this kernel is essentially a pure HBM-read pass: the lane reduction
    rides the XLU, the Gram rides the otherwise idle MXU.
    """
    @pl.when(jnp.logical_and(pl.program_id(1) == 0, pl.program_id(2) == 0))
    def _():
        rs_ref[...] = jnp.zeros_like(rs_ref)
        gram_ref[...] = jnp.zeros_like(gram_ref)

    a = jnp.concatenate([g_ref[...], x_ref[...]], axis=0)        # (Ct, T)
    rs_ref[...] += jnp.sum(a, axis=1, keepdims=True)             # XLU
    gram_ref[...] += jax.lax.dot_general(                        # MXU: a @ a.T
        a, a, (((1,), (1,)), ((), ())), preferred_element_type=jnp.float32)


def _make_psi_kernel(n_valid_cols, tile_cols, tiles_per_core, mask_tail):
    """Pass 2: BN-folded convs on the MXU, relu, psi projection + its stats."""

    def kernel(g_ref, x_ref, wcat_ref, c_ref, wp_ref, p_ref, ps_ref, pss_ref):
        @pl.when(jnp.logical_and(pl.program_id(1) == 0, pl.program_id(2) == 0))
        def _():
            ps_ref[...] = jnp.zeros_like(ps_ref)
            pss_ref[...] = jnp.zeros_like(pss_ref)

        # Combined BN-folded conv: relu(W_cat @ [g; x] + c) on the MXU.
        a = jnp.concatenate([g_ref[...], x_ref[...]], axis=0)    # (Ct, T)
        h = jnp.maximum(
            jnp.dot(wcat_ref[...], a, preferred_element_type=jnp.float32)
            + c_ref[...], 0.0)                                   # (F_int, T)

        # psi 1x1 conv (C_out = 1): weighted sublane reduction, lane dense.
        p = jnp.sum(wp_ref[...] * h, axis=0, keepdims=True)      # (1, T)
        p_ref[...] = p.astype(p_ref.dtype)

        if mask_tail:
            # Zero-padded tail columns must not enter the psi BN statistics.
            col0 = (pl.program_id(0) * tiles_per_core
                    + pl.program_id(2)) * tile_cols
            col = col0 + jax.lax.broadcasted_iota(jnp.int32, p.shape, 1)
            p = jnp.where(col < n_valid_cols, p, 0.0)
        ps_ref[...] += jnp.sum(p, axis=1, keepdims=True)
        pss_ref[...] += jnp.sum(p * p, axis=1, keepdims=True)

    return kernel


def _apply_kernel(x_ref, p_ref, sc_ref, sh_ref, out_ref):
    """Pass 3: psi = sigmoid(BN(p)), out = x * psi.  Fully parallel."""
    z = p_ref[...].astype(jnp.float32) * sc_ref[...] + sh_ref[...]   # (1, T)
    d = 1.0 + jnp.exp(-z)                                            # exp on EUP
    r = pl.reciprocal(d, approx=True)                                # EUP vrcp
    r = r * (2.0 - d * r)        # one Newton step (2 VPU ops on 1/8-density data)
    out_ref[...] = x_ref[...] * r                                    # lane dense


# --------------------------------------------------------------------------- #
# Wrapper
# --------------------------------------------------------------------------- #
def _fold_bn(s, ss, gamma, beta, count):
    """Fold training-mode BN (biased variance) into per-channel scale/shift."""
    mean = s / count
    var = jnp.maximum(ss / count - mean * mean, 0.0)   # guard f32 cancellation
    scale = gamma * jax.lax.rsqrt(var + _EPS)
    shift = beta - mean * scale
    return scale, shift


def _choose_tile(hw, cap_cols):
    """Pick (tile_cols, padded_hw): tile_cols a 128-multiple dividing padded_hw."""
    hw_p = pl.cdiv(hw, 128) * 128                       # lane-align
    cap = max(128, (min(cap_cols, hw_p) // 128) * 128)
    if hw_p <= cap:
        return hw_p, hw_p                               # single tile
    t = cap
    while t > 128 and hw_p % t != 0:
        t -= 128
    if t >= max(128, cap // 2):                         # good divisor found
        return t, hw_p
    # No reasonable divisor: pad H*W up to a multiple of a cap-sized tile.
    # TODO(synk): bound worst-case padding when hw_p is barely above cap.
    return cap, pl.cdiv(hw_p, cap) * cap


def attention_block_pallas(g_nchw, x_nchw, params, tile_cols=None,
                           p_dtype=jnp.float32):
    """g: (N, F_g, H, W), x: (N, F_l, H, W) -> (N, F_l, H, W)."""
    N, F_g, H, W = g_nchw.shape
    _, F_l, _, _ = x_nchw.shape
    F_int = params["wg"].shape[0]
    Ct = F_g + F_l
    HW = H * W
    M = N * HW                                   # true BN count
    f32 = jnp.float32

    t, HWp = _choose_tile(HW, tile_cols if tile_cols is not None
                          else _MAX_TILE_COLS)
    n_tiles = HWp // t
    ncores = 2 if n_tiles % 2 == 0 else 1        # v7x megacore split, passes 1-2
    tiles_per_core = n_tiles // ncores

    # Free reshape (contiguous collapse of H, W) -- no transpose, no HBM copy.
    g3 = g_nchw.reshape(N, F_g, HW).astype(f32)
    x3 = x_nchw.reshape(N, F_l, HW).astype(f32)
    if HWp != HW:
        g3 = jnp.pad(g3, ((0, 0), (0, 0), (0, HWp - HW)))
        x3 = jnp.pad(x3, ((0, 0), (0, 0), (0, HWp - HW)))

    # BlockSpecs shared by passes 1-2 (grid = (ncores, N, tiles_per_core)).
    def hw_tile(cdim):
        return pl.BlockSpec((None, cdim, t),
                            lambda c, n, j: (n, 0, c * tiles_per_core + j))

    def per_core(shape):
        return pl.BlockSpec((None,) + shape,
                            lambda c, n, j: (c,) + (0,) * len(shape))

    def const2d(shape):
        return pl.BlockSpec(shape, lambda c, n, j: (0, 0))

    stats_params = pltpu.CompilerParams(
        dimension_semantics=("parallel", "arbitrary", "arbitrary"),
        vmem_limit_bytes=_VMEM_LIMIT)

    # ---- pass 1: row sums + Gram of [g; x] (conv BN stats derive from them) -- #
    rs, gram = pl.pallas_call(
        _stats_kernel,
        out_shape=(jax.ShapeDtypeStruct((ncores, Ct, 1), f32),
                   jax.ShapeDtypeStruct((ncores, Ct, Ct), f32)),
        grid_spec=pltpu.PrefetchScalarGridSpec(
            num_scalar_prefetch=0,
            grid=(ncores, N, tiles_per_core),
            in_specs=[hw_tile(F_g), hw_tile(F_l)],
            out_specs=(per_core((Ct, 1)), per_core((Ct, Ct))),
        ),
        compiler_params=stats_params,
    )(g3, x3)

    rs = jnp.sum(rs, axis=0)[:, 0]               # (Ct,)   reduce per-core partials
    gram = jnp.sum(gram, axis=0)                 # (Ct, Ct)

    wg, wx = params["wg"], params["wx"]
    sum_g = wg @ rs[:F_g]                                      # (F_int,)
    sum_x = wx @ rs[F_g:]
    sumsq_g = jnp.sum((wg @ gram[:F_g, :F_g]) * wg, axis=1)    # diag(W G W^T)
    sumsq_x = jnp.sum((wx @ gram[F_g:, F_g:]) * wx, axis=1)

    # Conv biases never enter any kernel: a per-channel constant in front of a
    # training-mode BN is cancelled exactly by the mean subtraction.
    sc_g, sh_g = _fold_bn(sum_g, sumsq_g, params["gn_g"], params["gn_b"], M)
    sc_x, sh_x = _fold_bn(sum_x, sumsq_x, params["xn_g"], params["xn_b"], M)
    w_cat = jnp.concatenate([wg * sc_g[:, None], wx * sc_x[:, None]], axis=1)
    c_shift = (sh_g + sh_x)[:, None]                           # (F_int, 1)

    # ---- pass 2: staged psi pre-activation + its global statistics ---------- #
    psi_kernel = _make_psi_kernel(HW, t, tiles_per_core, HWp != HW)
    p_raw, ps, pss = pl.pallas_call(
        psi_kernel,
        out_shape=(jax.ShapeDtypeStruct((N, 1, HWp), p_dtype),
                   jax.ShapeDtypeStruct((ncores, 1, 1), f32),
                   jax.ShapeDtypeStruct((ncores, 1, 1), f32)),
        grid_spec=pltpu.PrefetchScalarGridSpec(
            num_scalar_prefetch=0,
            grid=(ncores, N, tiles_per_core),
            in_specs=[hw_tile(F_g), hw_tile(F_l),
                      const2d((F_int, Ct)), const2d((F_int, 1)),
                      const2d((F_int, 1))],
            out_specs=(pl.BlockSpec((None, 1, t),
                                    lambda c, n, j: (n, 0,
                                                     c * tiles_per_core + j)),
                       per_core((1, 1)), per_core((1, 1))),
        ),
        compiler_params=stats_params,
    )(g3, x3, w_cat, c_shift, params["wp"])

    sc_p, sh_p = _fold_bn(jnp.sum(ps), jnp.sum(pss),
                          params["pn_g"][0], params["pn_b"][0], M)
    sc_p = jnp.reshape(sc_p, (1, 1))
    sh_p = jnp.reshape(sh_p, (1, 1))

    # ---- pass 3: gate the skip connection (embarrassingly parallel) --------- #
    out3 = pl.pallas_call(
        _apply_kernel,
        out_shape=jax.ShapeDtypeStruct((N, F_l, HWp), f32),
        grid_spec=pltpu.PrefetchScalarGridSpec(
            num_scalar_prefetch=0,
            grid=(N, n_tiles),
            in_specs=[pl.BlockSpec((None, F_l, t), lambda n, j: (n, 0, j)),
                      pl.BlockSpec((None, 1, t), lambda n, j: (n, 0, j)),
                      pl.BlockSpec((1, 1), lambda n, j: (0, 0)),
                      pl.BlockSpec((1, 1), lambda n, j: (0, 0))],
            out_specs=pl.BlockSpec((None, F_l, t), lambda n, j: (n, 0, j)),
        ),
        compiler_params=pltpu.CompilerParams(
            dimension_semantics=("parallel", "parallel"),
            vmem_limit_bytes=_VMEM_LIMIT),
    )(x3, p_raw, sc_p, sh_p)

    if HWp != HW:
        out3 = out3[:, :, :HW]
    return out3.reshape(N, F_l, H, W)


# --------------------------------------------------------------------------- #
# Reference (plain JAX, exact PyTorch math including the conv biases)
# --------------------------------------------------------------------------- #
def attention_block_reference(g_nchw, x_nchw, params):
    N, F_g, H, W = g_nchw.shape
    _, F_l, _, _ = x_nchw.shape
    M = N * H * W

    def bn(y, gamma, beta):                       # y: (C, M); training-mode BN
        mean = jnp.mean(y, axis=1, keepdims=True)
        var = jnp.mean((y - mean) ** 2, axis=1, keepdims=True)
        return (y - mean) / jnp.sqrt(var + _EPS) * gamma[:, None] + beta[:, None]

    g2d = jnp.transpose(g_nchw, (1, 0, 2, 3)).reshape(F_g, M)
    x2d = jnp.transpose(x_nchw, (1, 0, 2, 3)).reshape(F_l, M)

    g1 = bn(params["wg"] @ g2d + params["bg"][:, None], params["gn_g"], params["gn_b"])
    x1 = bn(params["wx"] @ x2d + params["bx"][:, None], params["xn_g"], params["xn_b"])
    h = jnp.maximum(g1 + x1, 0.0)
    p = bn(params["wp"].T @ h + params["bp"][:, None], params["pn_g"], params["pn_b"])
    psi = jax.nn.sigmoid(p)                       # (1, M)
    out2d = x2d * psi
    return jnp.transpose(out2d.reshape(F_l, N, H, W), (1, 0, 2, 3))


def make_params(key, F_g, F_l, F_int):
    """Synthetic parameters matching the PyTorch module shapes.

    Conv2d(Cin, Cout, 1) weight (Cout, Cin, 1, 1) is stored as (Cout, Cin);
    the psi conv weight (1, F_int) is stored transposed as (F_int, 1) for the
    weighted-sublane-reduction formulation.
    """
    ks = jax.random.split(key, 8)
    f32 = jnp.float32
    return {
        "wg": 0.2 * jax.random.normal(ks[0], (F_int, F_g), f32),
        "bg": 0.1 * jax.random.normal(ks[1], (F_int,), f32),
        "gn_g": 1.0 + 0.1 * jax.random.normal(ks[2], (F_int,), f32),
        "gn_b": 0.1 * jax.random.normal(ks[3], (F_int,), f32),
        "wx": 0.2 * jax.random.normal(ks[4], (F_int, F_l), f32),
        "bx": 0.1 * jax.random.normal(ks[5], (F_int,), f32),
        "xn_g": 1.0 + 0.05 * jnp.arange(F_int, dtype=f32),
        "xn_b": 0.02 * jnp.arange(F_int, dtype=f32),
        "wp": 0.2 * jax.random.normal(ks[6], (F_int, 1), f32),
        "bp": 0.1 * jax.random.normal(ks[7], (1,), f32),
        "pn_g": jnp.full((1,), 1.1, f32),
        "pn_b": jnp.full((1,), -0.05, f32),
    }


if __name__ == "__main__":
    # Small shapes consistent with the module: F_g = F_l = 4, F_int = 8.
    N, F_g, F_l, F_int, H, W = 2, 4, 4, 8, 16, 16

    key = jax.random.PRNGKey(0)
    kg, kx, kp = jax.random.split(key, 3)
    g = jax.random.normal(kg, (N, F_g, H, W), jnp.float32)
    x = jax.random.normal(kx, (N, F_l, H, W), jnp.float32)
    params = make_params(kp, F_g, F_l, F_int)

    # tile_cols=128 -> two H*W tiles -> exercises the per-core split (ncores=2),
    # the cross-(N, tile) statistics accumulation and the pipelined path even at
    # this tiny demo size (real sizes auto-pick tiles up to 32768 columns).
    fwd = jax.jit(lambda g_, x_: attention_block_pallas(g_, x_, params,
                                                        tile_cols=128))
    out = jax.block_until_ready(fwd(g, x))

    ref = jax.block_until_ready(attention_block_reference(g, x, params))
    assert out.shape == (N, F_l, H, W)
    err = float(jnp.max(jnp.abs(out - ref)))
    # Tolerance 1e-3 leaves room for the EUP approximate reciprocal (one Newton
    # refinement keeps the observed error orders of magnitude below this).
    assert jnp.allclose(out, ref, atol=1e-3, rtol=1e-3), f"mismatch vs reference: {err}"

    print("KERNEL_OK")
</pallas_src>

<mosaic_0001>
module attributes {stable_mosaic.version = 11 : i64} {
  func.func @_stats_kernel(%arg0: i32, %arg1: i32, %arg2: i32, %arg3: memref<1x4x128xf32, #tpu.memory_space<vmem>>, %arg4: memref<1x4x128xf32, #tpu.memory_space<vmem>>, %arg5: memref<1x8x1xf32, #tpu.memory_space<vmem>>, %arg6: memref<1x8x8xf32, #tpu.memory_space<vmem>>) attributes {dimension_semantics = [#tpu.dimension_semantics<parallel>, #tpu.dimension_semantics<arbitrary>, #tpu.dimension_semantics<arbitrary>], iteration_bounds = array<i64: 2, 2, 1>, scalar_prefetch = 0 : i64, scratch_operands = 0 : i64, tpu.core_type = #tpu.core_type<tc>, window_params = [{transform_indices = @transform_0, window_bounds = array<i64: 1, 4, 128>}, {transform_indices = @transform_1, window_bounds = array<i64: 1, 4, 128>}, {transform_indices = @transform_2, window_bounds = array<i64: 1, 8, 1>}, {transform_indices = @transform_3, window_bounds = array<i64: 1, 8, 8>}]} {
    %c0_i32 = arith.constant 0 : i32
    %0 = arith.cmpi eq, %arg1, %c0_i32 : i32
    %c0_i32_0 = arith.constant 0 : i32
    %1 = arith.cmpi eq, %arg2, %c0_i32_0 : i32
    %2 = arith.andi %0, %1 : i1
    %3 = arith.extui %2 : i1 to i32
    %c0_i32_1 = arith.constant 0 : i32
    %4 = arith.cmpi ne, %3, %c0_i32_1 : i32
    scf.if %4 {
      %cst_20 = arith.constant 0.000000e+00 : f32
      %25 = vector.broadcast %cst_20 : f32 to vector<8x1xf32>
      %c0_21 = arith.constant 0 : index
      %c0_22 = arith.constant 0 : index
      %c0_23 = arith.constant 0 : index
      %26 = vector.load %arg5[%c0_21, %c0_22, %c0_23] : memref<1x8x1xf32, #tpu.memory_space<vmem>>, vector<1x8x1xf32>
      %27 = vector.shape_cast %26 : vector<1x8x1xf32> to vector<8x1xf32>
      %28 = vector.shape_cast %25 : vector<8x1xf32> to vector<1x8x1xf32>
      tpu.vector_store %arg5[%c0_21, %c0_22, %c0_23], %28 {strides = array<i32>} : memref<1x8x1xf32, #tpu.memory_space<vmem>>, vector<1x8x1xf32>,
      %cst_24 = arith.constant 0.000000e+00 : f32
      %29 = vector.broadcast %cst_24 : f32 to vector<8x8xf32>
      %c0_25 = arith.constant 0 : index
      %c0_26 = arith.constant 0 : index
      %c0_27 = arith.constant 0 : index
      %30 = vector.load %arg6[%c0_25, %c0_26, %c0_27] : memref<1x8x8xf32, #tpu.memory_space<vmem>>, vector<1x8x8xf32>
      %31 = vector.shape_cast %30 : vector<1x8x8xf32> to vector<8x8xf32>
      %32 = vector.shape_cast %29 : vector<8x8xf32> to vector<1x8x8xf32>
      tpu.vector_store %arg6[%c0_25, %c0_26, %c0_27], %32 {strides = array<i32>} : memref<1x8x8xf32, #tpu.memory_space<vmem>>, vector<1x8x8xf32>,
    } else {
    }
    %c0 = arith.constant 0 : index
    %c0_2 = arith.constant 0 : index
    %c0_3 = arith.constant 0 : index
    %5 = vector.load %arg3[%c0, %c0_2, %c0_3] : memref<1x4x128xf32, #tpu.memory_space<vmem>>, vector<1x4x128xf32>
    %6 = vector.shape_cast %5 : vector<1x4x128xf32> to vector<4x128xf32>
    %c0_4 = arith.constant 0 : index
    %c0_5 = arith.constant 0 : index
    %c0_6 = arith.constant 0 : index
    %7 = vector.load %arg4[%c0_4, %c0_5, %c0_6] : memref<1x4x128xf32, #tpu.memory_space<vmem>>, vector<1x4x128xf32>
    %8 = vector.shape_cast %7 : vector<1x4x128xf32> to vector<4x128xf32>
    %9 = tpu.concatenate %6, %8 in 0 : vector<4x128xf32>, vector<4x128xf32> -> vector<8x128xf32>
    %c0_7 = arith.constant 0 : index
    %c0_8 = arith.constant 0 : index
    %c0_9 = arith.constant 0 : index
    %10 = vector.load %arg5[%c0_7, %c0_8, %c0_9] : memref<1x8x1xf32, #tpu.memory_space<vmem>>, vector<1x8x1xf32>
    %11 = vector.shape_cast %10 : vector<1x8x1xf32> to vector<8x1xf32>
    %cst = arith.constant dense<0.000000e+00> : vector<8xf32>
    %12 = vector.multi_reduction <add>, %9, %cst [1] : vector<8x128xf32> to vector<8xf32>
    %13 = vector.shape_cast %12 : vector<8xf32> to vector<8x1xf32>
    %14 = arith.addf %11, %13 : vector<8x1xf32>
    %c0_10 = arith.constant 0 : index
    %c0_11 = arith.constant 0 : index
    %c0_12 = arith.constant 0 : index
    %15 = vector.load %arg5[%c0_10, %c0_11, %c0_12] : memref<1x8x1xf32, #tpu.memory_space<vmem>>, vector<1x8x1xf32>
    %16 = vector.shape_cast %15 : vector<1x8x1xf32> to vector<8x1xf32>
    %17 = vector.shape_cast %14 : vector<8x1xf32> to vector<1x8x1xf32>
    tpu.vector_store %arg5[%c0_10, %c0_11, %c0_12], %17 {strides = array<i32>} : memref<1x8x1xf32, #tpu.memory_space<vmem>>, vector<1x8x1xf32>,
    %c0_13 = arith.constant 0 : index
    %c0_14 = arith.constant 0 : index
    %c0_15 = arith.constant 0 : index
    %18 = vector.load %arg6[%c0_13, %c0_14, %c0_15] : memref<1x8x8xf32, #tpu.memory_space<vmem>>, vector<1x8x8xf32>
    %19 = vector.shape_cast %18 : vector<1x8x8xf32> to vector<8x8xf32>
    %cst_16 = arith.constant dense<0.000000e+00> : vector<8x8xf32>
    %20 = tpu.matmul %9, %9, %cst_16 {dimension_numbers = #tpu.dot_dimension_numbers<[1], [1], [0], [0], [0, 0, 1, 0], [], []>} : vector<8x128xf32>, vector<8x128xf32>, vector<8x8xf32> -> vector<8x8xf32>
    %21 = arith.addf %19, %20 : vector<8x8xf32>
    %c0_17 = arith.constant 0 : index
    %c0_18 = arith.constant 0 : index
    %c0_19 = arith.constant 0 : index
    %22 = vector.load %arg6[%c0_17, %c0_18, %c0_19] : memref<1x8x8xf32, #tpu.memory_space<vmem>>, vector<1x8x8xf32>
    %23 = vector.shape_cast %22 : vector<1x8x8xf32> to vector<8x8xf32>
    %24 = vector.shape_cast %21 : vector<8x8xf32> to vector<1x8x8xf32>
    tpu.vector_store %arg6[%c0_17, %c0_18, %c0_19], %24 {strides = array<i32>} : memref<1x8x8xf32, #tpu.memory_space<vmem>>, vector<1x8x8xf32>,
    return
  }
  func.func @transform_0(%arg0: i32, %arg1: i32, %arg2: i32) -> (i32, i32, i32) {
    %c1_i32 = arith.constant 1 : i32
    %0 = arith.muli %arg0, %c1_i32 : i32
    %1 = arith.addi %0, %arg2 : i32
    %c0_i32 = arith.constant 0 : i32
    %c0_i32_0 = arith.constant 0 : i32
    return %arg1, %c0_i32, %1 : i32, i32, i32
  }
  func.func @transform_1(%arg0: i32, %arg1: i32, %arg2: i32) -> (i32, i32, i32) {
    %c1_i32 = arith.constant 1 : i32
    %0 = arith.muli %arg0, %c1_i32 : i32
    %1 = arith.addi %0, %arg2 : i32
    %c0_i32 = arith.constant 0 : i32
    %c0_i32_0 = arith.constant 0 : i32
    return %arg1, %c0_i32, %1 : i32, i32, i32
  }
  func.func @transform_2(%arg0: i32, %arg1: i32, %arg2: i32) -> (i32, i32, i32) {
    %c0_i32 = arith.constant 0 : i32
    %c0_i32_0 = arith.constant 0 : i32
    %c0_i32_1 = arith.constant 0 : i32
    return %arg0, %c0_i32, %c0_i32_0 : i32, i32, i32
  }
  func.func @transform_3(%arg0: i32, %arg1: i32, %arg2: i32) -> (i32, i32, i32) {
    %c0_i32 = arith.constant 0 : i32
    %c0_i32_0 = arith.constant 0 : i32
    %c0_i32_1 = arith.constant 0 : i32
    return %arg0, %c0_i32, %c0_i32_0 : i32, i32, i32
  }
}

module attributes {stable_mosaic.version = 11 : i64} {
  func.func @kernel(%arg0: i32, %arg1: i32, %arg2: i32, %arg3: memref<1x4x128xf32, #tpu.memory_space<vmem>>, %arg4: memref<1x4x128xf32, #tpu.memory_space<vmem>>, %arg5: memref<8x8xf32, #tpu.memory_space<vmem>>, %arg6: memref<8x1xf32, #tpu.memory_space<vmem>>, %arg7: memref<8x1xf32, #tpu.memory_space<vmem>>, %arg8: memref<1x1x128xf32, #tpu.memory_space<vmem>>, %arg9: memref<1x1x1xf32, #tpu.memory_space<vmem>>, %arg10: memref<1x1x1xf32, #tpu.memory_space<vmem>>) attributes {dimension_semantics = [#tpu.dimension_semantics<parallel>, #tpu.dimension_semantics<arbitrary>, #tpu.dimension_semantics<arbitrary>], iteration_bounds = array<i64: 2, 2, 1>, scalar_prefetch = 0 : i64, scratch_operands = 0 : i64, tpu.core_type = #tpu.core_type<tc>, window_params = [{transform_indices = @transform_0, window_bounds = array<i64: 1, 4, 128>}, {transform_indices = @transform_1, window_bounds = array<i64: 1, 4, 128>}, {pipeline_mode = #tpu.pipeline_mode<synchronous>, transform_indices = @transform_2, window_bounds = array<i64: 8, 8>}, {pipeline_mode = #tpu.pipeline_mode<synchronous>, transform_indices = @transform_3, window_bounds = array<i64: 8, 1>}, {pipeline_mode = #tpu.pipeline_mode<synchronous>, transform_indices = @transform_4, window_bounds = array<i64: 8, 1>}, {transform_indices = @transform_5, window_bounds = array<i64: 1, 1, 128>}, {transform_indices = @transform_6, window_bounds = array<i64: 1, 1, 1>}, {transform_indices = @transform_7, window_bounds = array<i64: 1, 1, 1>}]} {
    %c0_i32 = arith.constant 0 : i32
    %0 = arith.cmpi eq, %arg1, %c0_i32 : i32
    %c0_i32_0 = arith.constant 0 : i32
    %1 = arith.cmpi eq, %arg2, %c0_i32_0 : i32
    %2 = arith.andi %0, %1 : i1
    %3 = arith.extui %2 : i1 to i32
    %c0_i32_1 = arith.constant 0 : i32
    %4 = arith.cmpi ne, %3, %c0_i32_1 : i32
    scf.if %4 {
      %cst_32 = arith.constant 0.000000e+00 : f32
      %42 = vector.broadcast %cst_32 : f32 to vector<1x1xf32>
      %c0_33 = arith.constant 0 : index
      %c0_34 = arith.constant 0 : index
      %c0_35 = arith.constant 0 : index
      %43 = vector.load %arg9[%c0_33, %c0_34, %c0_35] : memref<1x1x1xf32, #tpu.memory_space<vmem>>, vector<1x1x1xf32>
      %44 = vector.shape_cast %43 : vector<1x1x1xf32> to vector<1x1xf32>
      %45 = vector.shape_cast %42 : vector<1x1xf32> to vector<1x1x1xf32>
      tpu.vector_store %arg9[%c0_33, %c0_34, %c0_35], %45 {strides = array<i32>} : memref<1x1x1xf32, #tpu.memory_space<vmem>>, vector<1x1x1xf32>,
      %cst_36 = arith.constant 0.000000e+00 : f32
      %46 = vector.broadcast %cst_36 : f32 to vector<1x1xf32>
      %c0_37 = arith.constant 0 : index
      %c0_38 = arith.constant 0 : index
      %c0_39 = arith.constant 0 : index
      %47 = vector.load %arg10[%c0_37, %c0_38, %c0_39] : memref<1x1x1xf32, #tpu.memory_space<vmem>>, vector<1x1x1xf32>
      %48 = vector.shape_cast %47 : vector<1x1x1xf32> to vector<1x1xf32>
      %49 = vector.shape_cast %46 : vector<1x1xf32> to vector<1x1x1xf32>
      tpu.vector_store %arg10[%c0_37, %c0_38, %c0_39], %49 {strides = array<i32>} : memref<1x1x1xf32, #tpu.memory_space<vmem>>, vector<1x1x1xf32>,
    } else {
    }
    %c0 = arith.constant 0 : index
    %c0_2 = arith.constant 0 : index
    %c0_3 = arith.constant 0 : index
    %5 = vector.load %arg3[%c0, %c0_2, %c0_3] : memref<1x4x128xf32, #tpu.memory_space<vmem>>, vector<1x4x128xf32>
    %6 = vector.shape_cast %5 : vector<1x4x128xf32> to vector<4x128xf32>
    %c0_4 = arith.constant 0 : index
    %c0_5 = arith.constant 0 : index
    %c0_6 = arith.constant 0 : index
    %7 = vector.load %arg4[%c0_4, %c0_5, %c0_6] : memref<1x4x128xf32, #tpu.memory_space<vmem>>, vector<1x4x128xf32>
    %8 = vector.shape_cast %7 : vector<1x4x128xf32> to vector<4x128xf32>
    %9 = tpu.concatenate %6, %8 in 0 : vector<4x128xf32>, vector<4x128xf32> -> vector<8x128xf32>
    %c0_7 = arith.constant 0 : index
    %c0_8 = arith.constant 0 : index
    %10 = vector.load %arg5[%c0_7, %c0_8] : memref<8x8xf32, #tpu.memory_space<vmem>>, vector<8x8xf32>
    %cst = arith.constant dense<0.000000e+00> : vector<8x128xf32>
    %11 = tpu.matmul %10, %9, %cst {dimension_numbers = #tpu.dot_dimension_numbers<[1], [0], [0], [1], [0, 0, 1, 1], [], []>} : vector<8x8xf32>, vector<8x128xf32>, vector<8x128xf32> -> vector<8x128xf32>
    %c0_9 = arith.constant 0 : index
    %c0_10 = arith.constant 0 : index
    %12 = vector.load %arg6[%c0_9, %c0_10] : memref<8x1xf32, #tpu.memory_space<vmem>>, vector<8x1xf32>
    %13 = vector.broadcast %12 : vector<8x1xf32> to vector<8x128xf32>
    %14 = arith.addf %11, %13 : vector<8x128xf32>
    %cst_11 = arith.constant 0.000000e+00 : f32
    %15 = vector.broadcast %cst_11 : f32 to vector<8x128xf32>
    %16 = arith.maximumf %14, %15 : vector<8x128xf32>
    %c0_12 = arith.constant 0 : index
    %c0_13 = arith.constant 0 : index
    %17 = vector.load %arg7[%c0_12, %c0_13] : memref<8x1xf32, #tpu.memory_space<vmem>>, vector<8x1xf32>
    %18 = vector.broadcast %17 : vector<8x1xf32> to vector<8x128xf32>
    %19 = arith.mulf %18, %16 : vector<8x128xf32>
    %cst_14 = arith.constant dense<0.000000e+00> : vector<128xf32>
    %20 = vector.multi_reduction <add>, %19, %cst_14 [0] : vector<8x128xf32> to vector<128xf32>
    %21 = vector.shape_cast %20 : vector<128xf32> to vector<1x128xf32>
    %c0_15 = arith.constant 0 : index
    %c0_16 = arith.constant 0 : index
    %c0_17 = arith.constant 0 : index
    %22 = vector.load %arg8[%c0_15, %c0_16, %c0_17] : memref<1x1x128xf32, #tpu.memory_space<vmem>>, vector<1x1x128xf32>
    %23 = vector.shape_cast %22 : vector<1x1x128xf32> to vector<1x128xf32>
    %24 = vector.shape_cast %21 : vector<1x128xf32> to vector<1x1x128xf32>
    tpu.vector_store %arg8[%c0_15, %c0_16, %c0_17], %24 {strides = array<i32>} : memref<1x1x128xf32, #tpu.memory_space<vmem>>, vector<1x1x128xf32>,
    %c0_18 = arith.constant 0 : index
    %c0_19 = arith.constant 0 : index
    %c0_20 = arith.constant 0 : index
    %25 = vector.load %arg9[%c0_18, %c0_19, %c0_20] : memref<1x1x1xf32, #tpu.memory_space<vmem>>, vector<1x1x1xf32>
    %26 = vector.shape_cast %25 : vector<1x1x1xf32> to vector<1x1xf32>
    %cst_21 = arith.constant dense<0.000000e+00> : vector<1xf32>
    %27 = vector.multi_reduction <add>, %21, %cst_21 [1] : vector<1x128xf32> to vector<1xf32>
    %28 = vector.shape_cast %27 : vector<1xf32> to vector<1x1xf32>
    %29 = arith.addf %26, %28 : vector<1x1xf32>
    %c0_22 = arith.constant 0 : index
    %c0_23 = arith.constant 0 : index
    %c0_24 = arith.constant 0 : index
    %30 = vector.load %arg9[%c0_22, %c0_23, %c0_24] : memref<1x1x1xf32, #tpu.memory_space<vmem>>, vector<1x1x1xf32>
    %31 = vector.shape_cast %30 : vector<1x1x1xf32> to vector<1x1xf32>
    %32 = vector.shape_cast %29 : vector<1x1xf32> to vector<1x1x1xf32>
    tpu.vector_store %arg9[%c0_22, %c0_23, %c0_24], %32 {strides = array<i32>} : memref<1x1x1xf32, #tpu.memory_space<vmem>>, vector<1x1x1xf32>,
    %c0_25 = arith.constant 0 : index
    %c0_26 = arith.constant 0 : index
    %c0_27 = arith.constant 0 : index
    %33 = vector.load %arg10[%c0_25, %c0_26, %c0_27] : memref<1x1x1xf32, #tpu.memory_space<vmem>>, vector<1x1x1xf32>
    %34 = vector.shape_cast %33 : vector<1x1x1xf32> to vector<1x1xf32>
    %35 = arith.mulf %21, %21 : vector<1x128xf32>
    %cst_28 = arith.constant dense<0.000000e+00> : vector<1xf32>
    %36 = vector.multi_reduction <add>, %35, %cst_28 [1] : vector<1x128xf32> to vector<1xf32>
    %37 = vector.shape_cast %36 : vector<1xf32> to vector<1x1xf32>
    %38 = arith.addf %34, %37 : vector<1x1xf32>
    %c0_29 = arith.constant 0 : index
    %c0_30 = arith.constant 0 : index
    %c0_31 = arith.constant 0 : index
    %39 = vector.load %arg10[%c0_29, %c0_30, %c0_31] : memref<1x1x1xf32, #tpu.memory_space<vmem>>, vector<1x1x1xf32>
    %40 = vector.shape_cast %39 : vector<1x1x1xf32> to vector<1x1xf32>
    %41 = vector.shape_cast %38 : vector<1x1xf32> to vector<1x1x1xf32>
    tpu.vector_store %arg10[%c0_29, %c0_30, %c0_31], %41 {strides = array<i32>} : memref<1x1x1xf32, #tpu.memory_space<vmem>>, vector<1x1x1xf32>,
    return
  }
  func.func @transform_0(%arg0: i32, %arg1: i32, %arg2: i32) -> (i32, i32, i32) {
    %c1_i32 = arith.constant 1 : i32
    %0 = arith.muli %arg0, %c1_i32 : i32
    %1 = arith.addi %0, %arg2 : i32
    %c0_i32 = arith.constant 0 : i32
    %c0_i32_0 = arith.constant 0 : i32
    return %arg1, %c0_i32, %1 : i32, i32, i32
  }
  func.func @transform_1(%arg0: i32, %arg1: i32, %arg2: i32) -> (i32, i32, i32) {
    %c1_i32 = arith.constant 1 : i32
    %0 = arith.muli %arg0, %c1_i32 : i32
    %1 = arith.addi %0, %arg2 : i32
    %c0_i32 = arith.constant 0 : i32
    %c0_i32_0 = arith.constant 0 : i32
    return %arg1, %c0_i32, %1 : i32, i32, i32
  }
  func.func @transform_2(%arg0: i32, %arg1: i32, %arg2: i32) -> (i32, i32) {
    %c0_i32 = arith.constant 0 : i32
    %c0_i32_0 = arith.constant 0 : i32
    %c0_i32_1 = arith.constant 0 : i32
    return %c0_i32, %c0_i32_0 : i32, i32
  }
  func.func @transform_3(%arg0: i32, %arg1: i32, %arg2: i32) -> (i32, i32) {
    %c0_i32 = arith.constant 0 : i32
    %c0_i32_0 = arith.constant 0 : i32
    %c0_i32_1 = arith.constant 0 : i32
    return %c0_i32, %c0_i32_0 : i32, i32
  }
  func.func @transform_4(%arg0: i32, %arg1: i32, %arg2: i32) -> (i32, i32) {
    %c0_i32 = arith.constant 0 : i32
    %c0_i32_0 = arith.constant 0 : i32
    %c0_i32_1 = arith.constant 0 : i32
    return %c0_i32, %c0_i32_0 : i32, i32
  }
  func.func @transform_5(%arg0: i32, %arg1: i32, %arg2: i32) -> (i32, i32, i32) {
    %c1_i32 = arith.constant 1 : i32
    %0 = arith.muli %arg0, %c1_i32 : i32
    %1 = arith.addi %0, %arg2 : i32
    %c0_i32 = arith.constant 0 : i32
    %c0_i32_0 = arith.constant 0 : i32
    return %arg1, %c0_i32, %1 : i32, i32, i32
  }
  func.func @transform_6(%arg0: i32, %arg1: i32, %arg2: i32) -> (i32, i32, i32) {
    %c0_i32 = arith.constant 0 : i32
    %c0_i32_0 = arith.constant 0 : i32
    %c0_i32_1 = arith.constant 0 : i32
    return %arg0, %c0_i32, %c0_i32_0 : i32, i32, i32
  }
  func.func @transform_7(%arg0: i32, %arg1: i32, %arg2: i32) -> (i32, i32, i32) {
    %c0_i32 = arith.constant 0 : i32
    %c0_i32_0 = arith.constant 0 : i32
    %c0_i32_1 = arith.constant 0 : i32
    return %arg0, %c0_i32, %c0_i32_0 : i32, i32, i32
  }
}

module attributes {stable_mosaic.version = 11 : i64} {
  func.func @_apply_kernel(%arg0: i32, %arg1: i32, %arg2: memref<1x4x128xf32, #tpu.memory_space<vmem>>, %arg3: memref<1x1x128xf32, #tpu.memory_space<vmem>>, %arg4: memref<1x1xf32, #tpu.memory_space<vmem>>, %arg5: memref<1x1xf32, #tpu.memory_space<vmem>>, %arg6: memref<1x4x128xf32, #tpu.memory_space<vmem>>) attributes {dimension_semantics = [#tpu.dimension_semantics<parallel>, #tpu.dimension_semantics<parallel>], iteration_bounds = array<i64: 2, 2>, scalar_prefetch = 0 : i64, scratch_operands = 0 : i64, tpu.core_type = #tpu.core_type<tc>, window_params = [{transform_indices = @transform_0, window_bounds = array<i64: 1, 4, 128>}, {transform_indices = @transform_1, window_bounds = array<i64: 1, 1, 128>}, {pipeline_mode = #tpu.pipeline_mode<synchronous>, transform_indices = @transform_2, window_bounds = array<i64: 1, 1>}, {pipeline_mode = #tpu.pipeline_mode<synchronous>, transform_indices = @transform_3, window_bounds = array<i64: 1, 1>}, {transform_indices = @transform_4, window_bounds = array<i64: 1, 4, 128>}]} {
    %c0 = arith.constant 0 : index
    %c0_0 = arith.constant 0 : index
    %c0_1 = arith.constant 0 : index
    %0 = vector.load %arg3[%c0, %c0_0, %c0_1] : memref<1x1x128xf32, #tpu.memory_space<vmem>>, vector<1x1x128xf32>
    %1 = vector.shape_cast %0 : vector<1x1x128xf32> to vector<1x128xf32>
    %c0_2 = arith.constant 0 : index
    %c0_3 = arith.constant 0 : index
    %2 = vector.load %arg4[%c0_2, %c0_3] : memref<1x1xf32, #tpu.memory_space<vmem>>, vector<1x1xf32>
    %3 = vector.broadcast %2 : vector<1x1xf32> to vector<1x128xf32>
    %4 = arith.mulf %1, %3 : vector<1x128xf32>
    %c0_4 = arith.constant 0 : index
    %c0_5 = arith.constant 0 : index
    %5 = vector.load %arg5[%c0_4, %c0_5] : memref<1x1xf32, #tpu.memory_space<vmem>>, vector<1x1xf32>
    %6 = vector.broadcast %5 : vector<1x1xf32> to vector<1x128xf32>
    %7 = arith.addf %4, %6 : vector<1x128xf32>
    %cst = arith.constant 0.000000e+00 : f32
    %8 = vector.broadcast %cst : f32 to vector<1x128xf32>
    %9 = arith.subf %8, %7 : vector<1x128xf32>
    %10 = math.exp %9 : vector<1x128xf32>
    %cst_6 = arith.constant 1.000000e+00 : f32
    %11 = vector.broadcast %cst_6 : f32 to vector<1x128xf32>
    %12 = arith.addf %11, %10 : vector<1x128xf32>
    %13 = tpu.reciprocal %12 {approx = true} : vector<1x128xf32> -> vector<1x128xf32>
    %14 = arith.mulf %12, %13 : vector<1x128xf32>
    %cst_7 = arith.constant 2.000000e+00 : f32
    %15 = vector.broadcast %cst_7 : f32 to vector<1x128xf32>
    %16 = arith.subf %15, %14 : vector<1x128xf32>
    %17 = arith.mulf %13, %16 : vector<1x128xf32>
    %c0_8 = arith.constant 0 : index
    %c0_9 = arith.constant 0 : index
    %c0_10 = arith.constant 0 : index
    %18 = vector.load %arg2[%c0_8, %c0_9, %c0_10] : memref<1x4x128xf32, #tpu.memory_space<vmem>>, vector<1x4x128xf32>
    %19 = vector.shape_cast %18 : vector<1x4x128xf32> to vector<4x128xf32>
    %20 = vector.broadcast %17 : vector<1x128xf32> to vector<4x128xf32>
    %21 = arith.mulf %19, %20 : vector<4x128xf32>
    %c0_11 = arith.constant 0 : index
    %c0_12 = arith.constant 0 : index
    %c0_13 = arith.constant 0 : index
    %22 = vector.load %arg6[%c0_11, %c0_12, %c0_13] : memref<1x4x128xf32, #tpu.memory_space<vmem>>, vector<1x4x128xf32>
    %23 = vector.shape_cast %22 : vector<1x4x128xf32> to vector<4x128xf32>
    %24 = vector.shape_cast %21 : vector<4x128xf32> to vector<1x4x128xf32>
    tpu.vector_store %arg6[%c0_11, %c0_12, %c0_13], %24 {strides = array<i32>} : memref<1x4x128xf32, #tpu.memory_space<vmem>>, vector<1x4x128xf32>,
    return
  }
  func.func @transform_0(%arg0: i32, %arg1: i32) -> (i32, i32, i32) {
    %c0_i32 = arith.constant 0 : i32
    %c0_i32_0 = arith.constant 0 : i32
    return %arg0, %c0_i32, %arg1 : i32, i32, i32
  }
  func.func @transform_1(%arg0: i32, %arg1: i32) -> (i32, i32, i32) {
    %c0_i32 = arith.constant 0 : i32
    %c0_i32_0 = arith.constant 0 : i32
    return %arg0, %c0_i32, %arg1 : i32, i32, i32
  }
  func.func @transform_2(%arg0: i32, %arg1: i32) -> (i32, i32) {
    %c0_i32 = arith.constant 0 : i32
    %c0_i32_0 = arith.constant 0 : i32
    %c0_i32_1 = arith.constant 0 : i32
    return %c0_i32, %c0_i32_0 : i32, i32
  }
  func.func @transform_3(%arg0: i32, %arg1: i32) -> (i32, i32) {
    %c0_i32 = arith.constant 0 : i32
    %c0_i32_0 = arith.constant 0 : i32
    %c0_i32_1 = arith.constant 0 : i32
    return %c0_i32, %c0_i32_0 : i32, i32
  }
  func.func @transform_4(%arg0: i32, %arg1: i32) -> (i32, i32, i32) {
    %c0_i32 = arith.constant 0 : i32
    %c0_i32_0 = arith.constant 0 : i32
    return %arg0, %c0_i32, %arg1 : i32, i32, i32
  }
}

</mosaic_0001>

<bundles_post_ra>
// kernel: _lambda_.3
= control target key start
LH: loop header
LB: loop body
LE: loop exit
PB: predicated region body
PF: predicated region fallthrough
CT: control target
= control target key end

     0   :  { %s602_s12 = smov 0   ;;  %s604_s13 = smov 0   ;;  %s664_s0 = inlined_call_operand.vmem [shape: f32[2,4,256], index: 0, kind: input, shape index: {}]   ;;  %s665_s1 = inlined_call_operand.vmem [shape: f32[2,4,256], index: 1, kind: input, shape index: {}]   ;;  %s666_s2 = inlined_call_operand.vmem [shape: f32[2,8,1], index: 2, kind: output, shape index: {0}]   ;;  %s667_s3 = inlined_call_operand.vmem [shape: f32[2,8,8], index: 3, kind: output, shape index: {1}]  }
   0x1   :  { %s606_s14 = smov 0   ;;  %s608_s15 = smov 0  }
   0x2   :  { %s610_s16 = smov 0  }
   0x3 LB: > { %s29_s17 = sadd.s32 1, %s569_s14  ;;  %s33_s18 = sadd.s32 1, %s573_s15  ;;  %s577_s16 = sphi %s610_s16, %s14_s16   ;;  %s573_s15 = sphi %s608_s15, %s671_s15   ;;  %s569_s14 = sphi %s606_s14, %s670_s14   ;;  %s565_s13 = sphi %s604_s13, %s669_s13   ;;  %s561_s12 = sphi %s602_s12, %s668_s12  }
   0x4   : > { %p31_p0 = scmp.ge.s32.totalorder %s29_s17, 2  ;;  %p478_p1 = scmp.ge.s32.totalorder %s577_s16, 1 }
   0x5   : > { %p187_p2 = scmp.lt.s32.totalorder %s577_s16, 5 }
   0x6   : > { %s673_s17 = smov (%p31_p0, %s29_s17), 0  ;;  %s675_s18 = smov (!%p31_p0, %s33_s18), %s573_s15 }
   0x7   : > { %p188_p3 = pnand %p478_p1, %p187_p2  ;;  %p35_p4 = scmp.ge.s32.totalorder %s675_s18, 2 }
   0x8   : > { %p228_p5 = scmp.lt.s32.totalorder (!%p188_p3), %s561_s12, 1  ;;  %p230_p6 = scmp.lt.s32.totalorder (!%p188_p3), %s565_s13, 1 }
   0x9   : > { %s677_s18 = smov (%p35_p4, %s675_s18), 0  ;;  %191 = sbr.rel (%p188_p3) target bundleno = 251 (0xfb), region = 28 }
   0xa   : > { %p255_p7 = scmp.eq.s32.totalorder (!%p188_p3), %s561_s12, 0 }
  0x10   : > { %s679_s12 = smov (!%p228_p5, %s561_s12), 1  ;;  %s681_s13 = smov (!%p230_p6, %s565_s13), 1 }
  0x11   : > { %s479_s19 = sshll.u32 %s679_s12, 1  ;;  %s483_s21 = sshll.u32 %s681_s13, 3  ;;  %vm261_vm0 = vcmask (%p255_p7), 7168   ;;  %vm263_vm1 = vcmask (%p255_p7), 64512   ;;  %v579_v0 = vmov (%p255_p7), 0.0  }
  0x12   : > { %s233_s20 = sadd.s32 %s479_s19, %s681_s13  ;;  %s250_s25 = scalar_lea.vmem %s666_s2, %s483_s21 }
  0x13   : > { %s480_s22 = sshll.u32 %s233_s20, 2  ;;  %s254_s7 = scalar_lea.vmem %s667_s3, %s483_s21  ;;  %262 = vst.msk [vmem:[%s250_s25] sm:$0xff] (%p255_p7), %vm261_vm0, %v579_v0 }
  0x14   : > { %s235_s28 = scalar_lea.vmem %s664_s0, %s480_s22  ;;  %s245_s4 = scalar_lea.vmem %s665_s1, %s480_s22  ;;  %264 = vst.msk [vmem:[%s254_s7] sm:$0xff] (%p255_p7), %vm263_vm1, %v579_v0 }
  0x15   : > { %260 = sbr.rel (!%p255_p7) target bundleno = 28 (0x1c), region = 32 }
  0x1c PF: > { %v265_v1 = vld [vmem:[%s235_s28] sm:$0xf]  ;;  %vm270_vm2 = vcmask 1043456   ;;  %v580_v3 = vmov 0.0   ;;  %vm581_vm3 = vmmov 0   ;;  %vm276_vm4 = vcmask 7168  }
  0x1d   : > { %v266_v2 = vld [vmem:[%s245_s4] sm:$0xf]  ;;  %491 = vmatprep.subr.mxu0 %v580_v3  ;;  %493 = vmatprep.mubr.msk.f32.mxu0 %vm581_vm3, %v580_v3  ;;  %vm350_vm5 = vcmask 64512  }
  0x1e   : > { %v268_v4 = vrot.slane %v266_v2, 4  ;;  %v272_v6 = vld [vmem:[%s250_s25] sm:$0xff] }
  0x1f   : > { %v278_v9 = vld [vmem:[%s254_s7] sm:$0xff] }
  0x20   : > { %v271_v5 = vsel %vm270_vm2, %v265_v1, %v268_v4 }
  0x21   : > { %492 = vmatpush3.xpose.msra.mxu0 %v271_v5  ;;  %273 = vadd.xlane.f32.xlu0 %v271_v5 }
  0x24   : > { %494 = vmatmul.mubr.f32.vlgmr.msra.gmra.mrb[0].mxu0 %v271_v5 }
  0xae   : > { %v274_v7 = vpop.xlane.xlu0 %273 }
  0xaf   : > { %v275_v8 = vadd.f32 %v274_v7, %v272_v6 }
  0xb1   : > { %277 = vst.msk [vmem:[%s250_s25] sm:$0xff] %vm276_vm4, %v275_v8 }
  0xf7   : > { %v345_v10 = vpop.f32.mrb[0].mxu0 }
  0xf8   : > { %v349_v11 = vadd.f32 %v345_v10, %v278_v9  ;;  %v495_v12 = vpop.f32.mrb[1].mxu0 }
  0xfa   : > { %351 = vst.msk [vmem:[%s254_s7] sm:$0xff] %vm350_vm5, %v349_v11 }
  0xfb PF: > { %s14_s16 = sadd.s32 1, %s577_s16   ;;  %s668_s12 = smov %s569_s14 }
  0xfc   : > { %p11_p8 = scmp.ge.s32.totalorder %s14_s16, 6   ;;  %s669_s13 = smov %s573_s15 }
  0xfd   : > { %s670_s14 = smov %s673_s17  ;;  %s671_s15 = smov %s677_s18 }
  0xfe   :  { %13 = sbr.rel (!%p11_p8) target bundleno = 3 (0x3), region = 77 }

// kernel: _lambda_.5
= control target key start
LH: loop header
LB: loop body
LE: loop exit
PB: predicated region body
PF: predicated region fallthrough
CT: control target
= control target key end

     0   :  { %s532_s19 = smov 0   ;;  %s534_s20 = smov 0   ;;  %s586_s0 = inlined_call_operand.vmem [shape: f32[2,4,256], index: 0, kind: input, shape index: {}]   ;;  %s587_s1 = inlined_call_operand.vmem [shape: f32[2,1,256], index: 1, kind: input, shape index: {}]   ;;  %s588_s2 = inlined_call_operand.<no memory space> [shape: f32[1,1], index: 2, kind: input, shape index: {}]   ;;  %s589_s4 = inlined_call_operand.vmem [shape: f32[2,4,256], index: 4, kind: output, shape index: {}]   ;;  %s590_s3 = inlined_call_operand.<no memory space> [shape: f32[1,1], index: 3, kind: input, shape index: {}]  }
   0x1   :  { %v9_v0 = vstv %s588_s2  ;;  %v11_v1 = vstv %s590_s3  ;;  %s536_s21 = smov 0   ;;  %s538_s22 = smov 0  }
   0x2   :  { %10 = vst [vmem:[#allocation2] sm:$0x1] %v9_v0  ;;  %12 = vst [vmem:[#allocation3] sm:$0x1] %v11_v1  ;;  %s540_s23 = smov 0  }
   0x3 LB: > { %s27_s2 = sadd.s32 1, %s490_s21  ;;  %s30_s3 = sadd.s32 1, %s494_s22  ;;  %s498_s23 = sphi %s540_s23, %s18_s23   ;;  %s494_s22 = sphi %s538_s22, %s594_s22   ;;  %s490_s21 = sphi %s536_s21, %s593_s21   ;;  %s486_s20 = sphi %s534_s20, %s592_s20   ;;  %s482_s19 = sphi %s532_s19, %s591_s19  }
   0x4   : > { %p28_p0 = scmp.ge.s32.totalorder %s27_s2, 2  ;;  %p406_p1 = scmp.ge.s32.totalorder %s498_s23, 1 }
   0x5   : > { %p199_p2 = scmp.lt.s32.totalorder %s498_s23, 5 }
   0x6   : > { %s596_s2 = smov (%p28_p0, %s27_s2), 0  ;;  %s598_s3 = smov (!%p28_p0, %s30_s3), %s494_s22 }
   0x7   : > { %p200_p3 = pnand %p406_p1, %p199_p2  ;;  %p32_p4 = scmp.ge.s32.totalorder %s598_s3, 2 }
   0x8   : > { %v500_v3 = vmov (!%p200_p3), 0   ;;  %p238_p5 = scmp.lt.s32.totalorder (!%p200_p3), %s486_s20, 1  ;;  %p240_p6 = scmp.lt.s32.totalorder (!%p200_p3), %s482_s19, 1  ;;  %v268_v5 = vlaneseq (!%p200_p3) }
   0x9   : > { %s600_s3 = smov (%p32_p4, %s598_s3), 0  ;;  %203 = sbr.rel (%p200_p3) target bundleno = 186 (0xba), region = 36 }
   0xa   : > { %v262_v2 = vld [vmem:[#allocation2] sm:$0x1] (!%p200_p3)  ;;  %455 = vset.pattern.permute.xlu0 (!%p200_p3), %v500_v3  ;;  %v273_v4 = vld [vmem:[#allocation3] sm:$0x1] (!%p200_p3)  ;;  %v269_v6 = vshrl.u32 (!%p200_p3), %v268_v5, 7 }
   0xb   : > { %265 = vperm.xlu0 (!%p200_p3), %455, %v262_v2  }
   0xc   : > { %v270_v7 = vsub.s32 (!%p200_p3), 0, %v269_v6 }
   0xf   : > { %276 = vperm.xlu0 (!%p200_p3), %455, %v273_v4  }
  0x10   : > { %s602_s20 = smov (!%p238_p5, %s486_s20), 1  ;;  %s604_s19 = smov (!%p240_p6, %s482_s19), 1 }
  0x11   : > { %s407_s24 = sshll.u32 %s602_s20, 1 }
  0x12   : > { %s243_s25 = sadd.s32 %s407_s24, %s604_s19 }
  0x13   : > { %s252_s28 = scalar_lea.vmem %s587_s1, %s243_s25  ;;  %s408_s29 = sshll.u32 %s243_s25, 2 }
  0x14   : > { %v261_v10 = vld [vmem:[%s252_s28] sm:$0x1]  ;;  %s245_s6 = scalar_lea.vmem %s586_s0, %s408_s29  ;;  %s260_s9 = scalar_lea.vmem %s589_s4, %s408_s29 }
  0x15   : > { %v292_v23 = vld [vmem:[%s245_s6] sm:$0xf] }
  0x8a   : > { %v266_v8 = vpop.permute.xlu0 %265 }
  0x8b   : > { %v271_v9 = vrot.slane %v266_v8, %v270_v7 }
  0x8d   : > { %v272_v12 = vmul.f32 %v271_v9, %v261_v10 }
  0x8e   : > { %v277_v11 = vpop.permute.xlu0 %276 }
  0x8f   : > { %v282_v13 = vrot.slane %v277_v11, %v270_v7 }
  0x91   : > { %v283_v14 = vadd.f32 %v282_v13, %v272_v12 }
  0x93   : > { %v284_v15 = vsub.f32 0.0, %v283_v14 }
  0x95   : > { %v285_v16 = vmul.f32 1.442695, %v284_v15 }
  0x97   : > { %456 = vpow2.f32 %v285_v16 }
  0xa1   : > { %v457_v17 = vpop.eup %456 }
  0xa2   : > { %v287_v18 = vadd.f32 1.0, %v457_v17 }
  0xa4   : > { %458 = vrcp.f32 %v287_v18 }
  0xae   : > { %v459_v19 = vpop.eup %458 }
  0xaf   : > { %v289_v20 = vmul.f32 %v459_v19, %v287_v18 }
  0xb1   : > { %v290_v21 = vsub.f32 2.0, %v289_v20 }
  0xb3   : > { %v291_v22 = vmul.f32 %v459_v19, %v290_v21 }
  0xb5   : > { %v297_v24 = vrot.slane %v291_v22, %v270_v7 }
  0xb7   : > { %v299_v25 = vmul.f32 %v297_v24, %v292_v23 }
  0xb9   : > { %300 = vst [vmem:[%s260_s9] sm:$0xf] %v299_v25 }
  0xba PF: > { %s18_s23 = sadd.s32 1, %s498_s23   ;;  %s591_s19 = smov %s490_s21 }
  0xbb   : > { %p15_p7 = scmp.ge.s32.totalorder %s18_s23, 6   ;;  %s592_s20 = smov %s494_s22 }
  0xbc   : > { %s593_s21 = smov %s596_s2  ;;  %s594_s22 = smov %s600_s3 }
  0xbd   :  { %17 = sbr.rel (!%p15_p7) target bundleno = 3 (0x3), region = 69 }

// kernel: _lambda_.4
= control target key start
LH: loop header
LB: loop body
LE: loop exit
PB: predicated region body
PF: predicated region fallthrough
CT: control target
= control target key end

     0   :  { %s812_s24 = smov 0   ;;  %s814_s25 = smov 0   ;;  %s905_s0 = inlined_call_operand.vmem [shape: f32[2,4,256], index: 0, kind: input, shape index: {}]   ;;  %s906_s1 = inlined_call_operand.vmem [shape: f32[2,4,256], index: 1, kind: input, shape index: {}]   ;;  %s907_s2 = inlined_call_operand.vmem [shape: f32[8,8], index: 2, kind: input, shape index: {}]   ;;  %s908_s3 = inlined_call_operand.vmem [shape: f32[8,1], index: 3, kind: input, shape index: {}]   ;;  %s909_s4 = inlined_call_operand.vmem [shape: f32[8,1], index: 4, kind: input, shape index: {}]   ;;  %s910_s5 = inlined_call_operand.vmem [shape: f32[2,1,256], index: 5, kind: output, shape index: {0}]   ;;  %s911_s6 = inlined_call_operand.vmem [shape: f32[2,1,1], index: 6, kind: output, shape index: {1}]   ;;  %s912_s7 = inlined_call_operand.vmem [shape: f32[2,1,1], index: 7, kind: output, shape index: {2}]  }
   0x1   :  { %s816_s26 = smov 0   ;;  %s818_s27 = smov 0  }
   0x2   :  { %s820_s28 = smov 0  }
   0x3 LB: > { %s33_s29 = sadd.s32 1, %s758_s26  ;;  %s37_s30 = sadd.s32 1, %s762_s27  ;;  %s766_s28 = sphi %s820_s28, %s18_s28   ;;  %s762_s27 = sphi %s818_s27, %s916_s27   ;;  %s758_s26 = sphi %s816_s26, %s915_s26   ;;  %s754_s25 = sphi %s814_s25, %s914_s25   ;;  %s750_s24 = sphi %s812_s24, %s913_s24  }
   0x4   : > { %p35_p0 = scmp.ge.s32.totalorder %s33_s29, 2  ;;  %p665_p1 = scmp.ge.s32.totalorder %s766_s28, 1 }
   0x5   : > { %p293_p2 = scmp.lt.s32.totalorder %s766_s28, 5 }
   0x6   : > { %s918_s29 = smov (%p35_p0, %s33_s29), 0  ;;  %s920_s30 = smov (!%p35_p0, %s37_s30), %s762_s27 }
   0x7   : > { %p294_p3 = pnand %p665_p1, %p293_p2  ;;  %p39_p4 = scmp.ge.s32.totalorder %s920_s30, 2 }
   0x8   : > { %p348_p5 = scmp.lt.s32.totalorder (!%p294_p3), %s750_s24, 1  ;;  %p350_p6 = scmp.lt.s32.totalorder (!%p294_p3), %s754_s25, 1 }
   0x9   : > { %s922_s30 = smov (%p39_p4, %s920_s30), 0  ;;  %297 = sbr.rel (%p294_p3) target bundleno = 413 (0x19d), region = 40 }
   0xa   : > { %p382_p7 = scmp.eq.s32.totalorder (!%p294_p3), %s750_s24, 0 }
  0x10   : > { %s924_s24 = smov (!%p348_p5, %s750_s24), 1  ;;  %s926_s25 = smov (!%p350_p6, %s754_s25), 1 }
  0x11   : > { %s666_s8 = sshll.u32 %s924_s24, 1  ;;  %s852_s12 = scalar_lea.vmem %s911_s6, %s926_s25  ;;  %vm388_vm0 = vcmask (%p382_p7), 0   ;;  %v768_v0 = vmov (%p382_p7), 0.0  }
  0x12   : > { %s847_s9 = sadd.s32 %s666_s8, %s926_s25  ;;  %s868_s8 = scalar_lea.vmem %s912_s7, %s926_s25  ;;  %389 = vst.msk [vmem:[%s852_s12] sm:$0x1] (%p382_p7), %vm388_vm0, %v768_v0 }
  0x13   : > { %s667_s13 = sshll.u32 %s847_s9, 2  ;;  %s374_s16 = scalar_lea.vmem %s910_s5, %s847_s9  ;;  %390 = vst.msk [vmem:[%s868_s8] sm:$0x1] (%p382_p7), %vm388_vm0, %v768_v0 }
  0x14   : > { %s355_s19 = scalar_lea.vmem %s905_s0, %s667_s13  ;;  %s365_s22 = scalar_lea.vmem %s906_s1, %s667_s13 }
  0x15   : > { %387 = sbr.rel (!%p382_p7) target bundleno = 28 (0x1c), region = 44 }
  0x1c PF: > { %v391_v1 = vld [vmem:[%s355_s19] sm:$0xf]  ;;  %vm396_vm1 = vcmask 1043456   ;;  %v769_v3 = vmov 0.0   ;;  %vm770_vm2 = vmmov 0   ;;  %vm405_vm3 = vcmask 64512  }
  0x1d   : > { %v392_v2 = vld [vmem:[%s365_s22] sm:$0xf]  ;;  %678 = vmatprep.subr.mxu0 %v769_v3  ;;  %680 = vmatprep.mubr.msk.f32.mxu0 %vm770_vm2, %v769_v3  ;;  %v771_v7 = vmov 0   ;;  %vm498_vm4 = vcmask 0  }
  0x1e   : > { %v394_v4 = vrot.slane %v392_v2, 4  ;;  %v399_v5 = vld [vmem:[%s908_s3] sm:$0xff]  ;;  %727 = vset.pattern.permute.xlu0 %v771_v7 }
  0x1f   : > { %v398_v6 = vld [vmem:[%s907_s2] sm:$0xff]  ;;  %402 = vperm.xlu0 %727, %v399_v5  }
  0x20   : > { %v397_v8 = vsel %vm396_vm1, %v391_v1, %v394_v4  ;;  %v480_v9 = vld [vmem:[%s909_s4] sm:$0xff] }
  0x21   : > { %679 = vmatpush3.msra.mxu0 %v397_v8  ;;  %v494_v24 = vld [vmem:[%s852_s12] sm:$0x1] }
  0x22   : > { %681 = vmatmul.mubr.msk.f32.vlgmr.msra.gmra.mrb[0].mxu0 %vm405_vm3, %v398_v6  ;;  %v500_v27 = vld [vmem:[%s868_s8] sm:$0x1] }
  0x23   : > { %483 = vperm.xlu0 %727, %v480_v9  }
  0x9e   : > { %v403_v10 = vpop.permute.xlu0 %402 }
  0xa2   : > { %v484_v15 = vpop.permute.xlu0 %483 }
  0xf5   : > { %v475_v11 = vpop.f32.mrb[0].mxu0 }
  0xf6   : > { %v476_v12 = vadd.f32 %v475_v11, %v403_v10  ;;  %v682_v13 = vpop.f32.mrb[1].mxu0 }
  0xf8   : > { %v479_v14 = vmax.f32 %v476_v12, 0.0 }
  0xfa   : > { %v486_v16 = vmul.f32 %v484_v15, %v479_v14 }
  0xfc   : > { %v487_v17 = vrot.slane %v486_v16, 4 }
  0xfe   : > { %v488_v18 = vadd.f32 %v487_v17, %v486_v16 }
 0x100   : > { %v489_v19 = vrot.slane %v488_v18, 2 }
 0x102   : > { %v490_v20 = vadd.f32 %v489_v19, %v488_v18 }
 0x104   : > { %v491_v21 = vrot.slane %v490_v20, 1 }
 0x106   : > { %v492_v22 = vadd.f32 %v491_v21, %v490_v20 }
 0x108   : > { %495 = vadd.xlane.f32.xlu1 %v492_v22  ;;  %493 = vst [vmem:[%s374_s16] sm:$0x1] %v492_v22  ;;  %v501_v23 = vmul.f32 %v492_v22, %v492_v22 }
 0x10c   : > { %502 = vadd.xlane.f32.xlu1 %v501_v23 }
 0x195   : > { %v496_v25 = vpop.xlane.xlu1 %495 }
 0x196   : > { %v497_v26 = vadd.f32 %v496_v25, %v494_v24 }
 0x198   : > { %499 = vst.msk [vmem:[%s852_s12] sm:$0x1] %vm498_vm4, %v497_v26 }
 0x199   : > { %v503_v28 = vpop.xlane.xlu1 %502 }
 0x19a   : > { %v504_v29 = vadd.f32 %v503_v28, %v500_v27 }
 0x19c   : > { %505 = vst.msk [vmem:[%s868_s8] sm:$0x1] %vm498_vm4, %v504_v29 }
 0x19d PF: > { %s18_s28 = sadd.s32 1, %s766_s28   ;;  %s913_s24 = smov %s758_s26 }
 0x19e   : > { %p15_p8 = scmp.ge.s32.totalorder %s18_s28, 6   ;;  %s914_s25 = smov %s762_s27 }
 0x19f   : > { %s915_s26 = smov %s918_s29  ;;  %s916_s27 = smov %s922_s30 }
 0x1a0   :  { %17 = sbr.rel (!%p15_p8) target bundleno = 3 (0x3), region = 101 }

</bundles_post_ra>
